<compile_context>
chip_gen: v7x
topology: tpu7x:2x2x1
jax: 0.10.0
libtpu: 0.0.40
codegen_flags: <defaults>
</compile_context>

<pallas_src>
import jax
import jax.numpy as jnp
from jax.experimental import pallas as pl
from jax.experimental.pallas import tpu as pltpu

# Synthetic constants standing in for DAYS / TIMES / SKILLS of the original repo.
DAYS = list(range(7))
TIMES = list(range(3))
SKILLS = list(range(4))
INPUT_DIM = len(DAYS) + len(TIMES) + len(SKILLS) + (len(SKILLS) + len(DAYS) + 3)  # 28
HIDDEN_DIM = 32


def _policy_kernel(xT_ref, w1_ref, b1_ref, w2_ref, b2_ref, out_ref):
    # xT_ref : (D_pad, TB)  compute dtype  (batch on the lane axis)
    # w1_ref : (H, D_pad)   compute dtype  (pre-oriented, no in-kernel .T)
    # b1_ref : (H, 1)       f32
    # w2_ref : (H, 1)       f32
    # b2_ref : (1, 1)       f32, SMEM scalar
    # out_ref: (1, TB)      f32  (lane-dense output block -> unmasked stores)
    h = jnp.dot(w1_ref[...], xT_ref[...],
                preferred_element_type=jnp.float32)          # (H, TB) f32 acc on MXU
    h = jnp.maximum(h + b1_ref[...], 0.0)                    # bias + ReLU in f32 (VPU)
    # fc2: broadcast-mul (VPU) + sublane reduction (XLU) — avoids an M=1 MXU matmul.
    score = jnp.sum(h * w2_ref[...], axis=0, keepdims=True)  # (1, TB)
    out_ref[...] = (score + b2_ref[0, 0]).astype(out_ref.dtype)


def _round_up(n, m):
    return ((n + m - 1) // m) * m


def policy_network_forward(x, w1, b1, w2, b2, *,
                           compute_dtype=jnp.float32, batch_tile=1024):
    """x: (B, D) f32; W1 (H, D), b1 (1, H), W2 (1, H), b2 (1, 1) PyTorch-style.

    Returns (B, 1) f32 scores, matching PolicyNetwork.forward semantics.
    compute_dtype=jnp.bfloat16 feeds bf16 into the MXU (f32 accumulation) for
    v6e/v7x throughput; the elementwise epilogue always stays f32 (v5e friendly).
    """
    B, D = x.shape
    H = w1.shape[0]

    # Pad the contraction dim to a sublane multiple and the batch (lane) dim to a
    # multiple of the lane tile. Zero padding does not change the result.
    D_pad = _round_up(D, 8)
    TB = min(_round_up(batch_tile, 128), _round_up(B, 128))
    B_pad = _round_up(B, TB)

    # All layout plumbing lives in the wrapper (transpose / pad / cast), not the kernel.
    xT = jnp.pad(x.T.astype(compute_dtype), ((0, D_pad - D), (0, B_pad - B)))
    w1p = jnp.pad(w1.astype(compute_dtype), ((0, 0), (0, D_pad - D)))
    b1c = b1.reshape(H, 1).astype(jnp.float32)
    w2c = w2.reshape(H, 1).astype(jnp.float32)
    b2s = b2.reshape(1, 1).astype(jnp.float32)

    grid = (B_pad // TB,)
    outT = pl.pallas_call(
        _policy_kernel,
        out_shape=jax.ShapeDtypeStruct((1, B_pad), jnp.float32),
        grid_spec=pltpu.PrefetchScalarGridSpec(
            num_scalar_prefetch=0,
            grid=grid,
            in_specs=[
                # x^T tiles stream over the batch (lane) axis.
                pl.BlockSpec((D_pad, TB), lambda i: (0, i),
                             memory_space=pltpu.MemorySpace.VMEM),
                # Weights / biases: constant index map -> VMEM-resident across the grid.
                pl.BlockSpec((H, D_pad), lambda i: (0, 0),
                             memory_space=pltpu.MemorySpace.VMEM),
                pl.BlockSpec((H, 1), lambda i: (0, 0),
                             memory_space=pltpu.MemorySpace.VMEM),
                pl.BlockSpec((H, 1), lambda i: (0, 0),
                             memory_space=pltpu.MemorySpace.VMEM),
                # b2 is a single scalar: keep it in SMEM, untiled.
                pl.BlockSpec(memory_space=pltpu.MemorySpace.SMEM),
            ],
            out_specs=pl.BlockSpec((1, TB), lambda i: (0, i),
                                   memory_space=pltpu.MemorySpace.VMEM),
        ),
        compiler_params=pltpu.CompilerParams(
            dimension_semantics=("parallel",),  # megacore sharding on v7x
        ),
    )(xT, w1p, b1c, w2c, b2s)

    # Un-transpose / un-pad in the wrapper.
    return outT[:, :B].T  # (B, 1)


def init_params(key, input_dim=INPUT_DIM, hidden_dim=HIDDEN_DIM):
    """Deterministic init mimicking nn.Linear's U(-1/sqrt(fan_in), 1/sqrt(fan_in))."""
    k1, k2, k3, k4 = jax.random.split(key, 4)
    bound1 = 1.0 / jnp.sqrt(input_dim)
    bound2 = 1.0 / jnp.sqrt(hidden_dim)
    w1 = jax.random.uniform(k1, (hidden_dim, input_dim), jnp.float32, -bound1, bound1)
    b1 = jax.random.uniform(k2, (1, hidden_dim), jnp.float32, -bound1, bound1)
    w2 = jax.random.uniform(k3, (1, hidden_dim), jnp.float32, -bound2, bound2)
    b2 = jax.random.uniform(k4, (1, 1), jnp.float32, -bound2, bound2)
    return w1, b1, w2, b2


if __name__ == "__main__":
    key = jax.random.PRNGKey(0)
    kx, kp = jax.random.split(key)

    B = 8
    x = jax.random.normal(kx, (B, INPUT_DIM), jnp.float32)
    w1, b1, w2, b2 = init_params(kp)

    # Pure-JAX reference (same math as the PyTorch forward).
    ref = jnp.maximum(x @ w1.T + b1, 0.0) @ w2.T + b2

    # Jit the wrapper so layout plumbing (transpose/pad/cast/slice) fuses around
    # the pallas_call; compute_dtype / batch_tile are static.
    fwd = jax.jit(policy_network_forward,
                  static_argnames=("compute_dtype", "batch_tile"))

    # f32 path: exact match to the reference.
    score_f32 = jax.block_until_ready(
        fwd(x, w1, b1, w2, b2, compute_dtype=jnp.float32))
    assert score_f32.shape == (B, 1)
    assert jnp.allclose(score_f32, ref, atol=1e-5), "f32 mismatch vs reference"

    # bf16 MXU path (v6e/v7x perf dtype): f32 accumulation, looser tolerance vs f32 ref.
    score_bf16 = jax.block_until_ready(
        fwd(x, w1, b1, w2, b2, compute_dtype=jnp.bfloat16))
    assert score_bf16.shape == (B, 1)
    assert jnp.allclose(score_bf16, ref, atol=5e-2, rtol=5e-2), "bf16 mismatch vs reference"

    print("KERNEL_OK")
</pallas_src>

<mosaic_0001>
module attributes {stable_mosaic.version = 11 : i64} {
  func.func @_policy_kernel(%arg0: i32, %arg1: memref<32x128xf32, #tpu.memory_space<vmem>>, %arg2: memref<32x32xf32, #tpu.memory_space<vmem>>, %arg3: memref<32x1xf32, #tpu.memory_space<vmem>>, %arg4: memref<32x1xf32, #tpu.memory_space<vmem>>, %arg5: memref<1x1xf32, #tpu.memory_space<smem>>, %arg6: memref<1x128xf32, #tpu.memory_space<vmem>>) attributes {dimension_semantics = [#tpu.dimension_semantics<parallel>], iteration_bounds = array<i64: 1>, scalar_prefetch = 0 : i64, scratch_operands = 0 : i64, tpu.core_type = #tpu.core_type<tc>, window_params = [{transform_indices = @transform_0, window_bounds = array<i64: 32, 128>}, {pipeline_mode = #tpu.pipeline_mode<synchronous>, transform_indices = @transform_1, window_bounds = array<i64: 32, 32>}, {pipeline_mode = #tpu.pipeline_mode<synchronous>, transform_indices = @transform_2, window_bounds = array<i64: 32, 1>}, {pipeline_mode = #tpu.pipeline_mode<synchronous>, transform_indices = @transform_3, window_bounds = array<i64: 32, 1>}, {transform_indices = @transform_4, window_bounds = array<i64: 1, 1>}, {transform_indices = @transform_5, window_bounds = array<i64: 1, 128>}]} {
    %c0 = arith.constant 0 : index
    %c0_0 = arith.constant 0 : index
    %0 = vector.load %arg2[%c0, %c0_0] : memref<32x32xf32, #tpu.memory_space<vmem>>, vector<32x32xf32>
    %c0_1 = arith.constant 0 : index
    %c0_2 = arith.constant 0 : index
    %1 = vector.load %arg1[%c0_1, %c0_2] : memref<32x128xf32, #tpu.memory_space<vmem>>, vector<32x128xf32>
    %cst = arith.constant dense<0.000000e+00> : vector<32x128xf32>
    %2 = tpu.matmul %0, %1, %cst {dimension_numbers = #tpu.dot_dimension_numbers<[1], [0], [0], [1], [0, 0, 1, 1], [], []>} : vector<32x32xf32>, vector<32x128xf32>, vector<32x128xf32> -> vector<32x128xf32>
    %c0_3 = arith.constant 0 : index
    %c0_4 = arith.constant 0 : index
    %3 = vector.load %arg3[%c0_3, %c0_4] : memref<32x1xf32, #tpu.memory_space<vmem>>, vector<32x1xf32>
    %4 = vector.broadcast %3 : vector<32x1xf32> to vector<32x128xf32>
    %5 = arith.addf %2, %4 : vector<32x128xf32>
    %cst_5 = arith.constant 0.000000e+00 : f32
    %6 = vector.broadcast %cst_5 : f32 to vector<32x128xf32>
    %7 = arith.maximumf %5, %6 : vector<32x128xf32>
    %c0_6 = arith.constant 0 : index
    %c0_7 = arith.constant 0 : index
    %8 = vector.load %arg4[%c0_6, %c0_7] : memref<32x1xf32, #tpu.memory_space<vmem>>, vector<32x1xf32>
    %9 = vector.broadcast %8 : vector<32x1xf32> to vector<32x128xf32>
    %10 = arith.mulf %7, %9 : vector<32x128xf32>
    %cst_8 = arith.constant dense<0.000000e+00> : vector<128xf32>
    %11 = vector.multi_reduction <add>, %10, %cst_8 [0] : vector<32x128xf32> to vector<128xf32>
    %12 = vector.shape_cast %11 : vector<128xf32> to vector<1x128xf32>
    %c0_9 = arith.constant 0 : index
    %c0_10 = arith.constant 0 : index
    %13 = memref.load %arg5[%c0_9, %c0_10] : memref<1x1xf32, #tpu.memory_space<smem>>
    %14 = vector.broadcast %13 : f32 to vector<1x128xf32>
    %15 = arith.addf %12, %14 : vector<1x128xf32>
    %c0_11 = arith.constant 0 : index
    %c0_12 = arith.constant 0 : index
    %16 = vector.load %arg6[%c0_11, %c0_12] : memref<1x128xf32, #tpu.memory_space<vmem>>, vector<1x128xf32>
    tpu.vector_store %arg6[%c0_11, %c0_12], %15 {strides = array<i32>} : memref<1x128xf32, #tpu.memory_space<vmem>>, vector<1x128xf32>,
    return
  }
  func.func @transform_0(%arg0: i32) -> (i32, i32) {
    %c0_i32 = arith.constant 0 : i32
    %c0_i32_0 = arith.constant 0 : i32
    return %c0_i32, %arg0 : i32, i32
  }
  func.func @transform_1(%arg0: i32) -> (i32, i32) {
    %c0_i32 = arith.constant 0 : i32
    %c0_i32_0 = arith.constant 0 : i32
    %c0_i32_1 = arith.constant 0 : i32
    return %c0_i32, %c0_i32_0 : i32, i32
  }
  func.func @transform_2(%arg0: i32) -> (i32, i32) {
    %c0_i32 = arith.constant 0 : i32
    %c0_i32_0 = arith.constant 0 : i32
    %c0_i32_1 = arith.constant 0 : i32
    return %c0_i32, %c0_i32_0 : i32, i32
  }
  func.func @transform_3(%arg0: i32) -> (i32, i32) {
    %c0_i32 = arith.constant 0 : i32
    %c0_i32_0 = arith.constant 0 : i32
    %c0_i32_1 = arith.constant 0 : i32
    return %c0_i32, %c0_i32_0 : i32, i32
  }
  func.func @transform_4(%arg0: i32) -> (i32, i32) {
    %c0_i32 = arith.constant 0 : i32
    %c0_i32_0 = arith.constant 0 : i32
    %c0_i32_1 = arith.constant 0 : i32
    return %c0_i32, %c0_i32_0 : i32, i32
  }
  func.func @transform_5(%arg0: i32) -> (i32, i32) {
    %c0_i32 = arith.constant 0 : i32
    %c0_i32_0 = arith.constant 0 : i32
    return %c0_i32, %arg0 : i32, i32
  }
}

</mosaic_0001>

<bundles_post_ra>
// kernel: policy_network_forward.1
= control target key start
LH: loop header
LB: loop body
LE: loop exit
PB: predicated region body
PF: predicated region fallthrough
CT: control target
= control target key end

     0   :  { %vm53_vm0 = vcmask 261120   ;;  %v241_v3 = vmov 0   ;;  %s330_s0 = inlined_call_operand.vmem [shape: f32[32,128], index: 0, kind: input, shape index: {}]   ;;  %s331_s1 = inlined_call_operand.vmem [shape: f32[32,32], index: 1, kind: input, shape index: {}]   ;;  %s332_s2 = inlined_call_operand.vmem [shape: f32[32,1], index: 2, kind: input, shape index: {}]   ;;  %s333_s3 = inlined_call_operand.vmem [shape: f32[32,1], index: 3, kind: input, shape index: {}]   ;;  %s334_s4 = inlined_call_operand.<no memory space> [shape: f32[1,1], index: 4, kind: input, shape index: {}]   ;;  %s335_s5 = inlined_call_operand.vmem [shape: f32[1,128], index: 5, kind: output, shape index: {}]  }
   0x1   :  { %v25_v0 = vld [vmem:[%s330_s0] sm:$0xff]  ;;  %v26_v1 = vld [vmem:[%s330_s0 + $0x8] sm:$0xff]  ;;  %v27_v2 = vld [vmem:[%s330_s0 + $0x10] sm:$0xff]  ;;  %239 = vset.pattern.permute.xlu0 %v241_v3  ;;  %240 = vset.pattern.permute.xlu1 %v241_v3  ;;  %v193_v51 = vstv %s334_s4 }
   0x2   :  { %v226_v4 = vpack.c.bf16 %v26_v1, %v25_v0  ;;  %v28_v5 = vld [vmem:[%s330_s0 + $0x18] sm:$0xff]  ;;  %v21_v6 = vld [vmem:[%s331_s1] sm:$0xff]  ;;  %v23_v7 = vld [vmem:[%s331_s1 + $0x10] sm:$0xff] }
   0x3   :  { %v230_v8 = vpack.c.bf16 %v28_v5, %v27_v2  ;;  %220 = vmatprep.mubr.msk.f32.mxu0 %vm53_vm0, %v21_v6  ;;  %223 = vmatprep.mubr.msk.f32.mxu1 %vm53_vm0, %v23_v7  ;;  %v29_v9 = vld [vmem:[%s332_s2] sm:$0xff]  ;;  %v31_v10 = vld [vmem:[%s332_s2 + $0x10] sm:$0xff]  ;;  %v30_v11 = vld [vmem:[%s332_s2 + $0x8] sm:$0xff] }
   0x4   :  { %227 = vmatprep.subr.bf16.mxu0 %v226_v4  ;;  %234 = vmatprep.subr.bf16.mxu1 %v226_v4  ;;  %v32_v12 = vld [vmem:[%s332_s2 + $0x18] sm:$0xff]  ;;  %v22_v13 = vld [vmem:[%s331_s1 + $0x8] sm:$0xff]  ;;  %v155_v15 = vld [vmem:[%s333_s3] sm:$0xff] }
   0x5   :  { %229 = vmatpush3.bf16.msra.mxu0 %v226_v4  ;;  %236 = vmatpush3.bf16.msra.mxu1 %v226_v4  ;;  %v24_v14 = vld [vmem:[%s331_s1 + $0x18] sm:$0xff]  ;;  %v156_v16 = vld [vmem:[%s333_s3 + $0x8] sm:$0xff]  ;;  %v157_v17 = vld [vmem:[%s333_s3 + $0x10] sm:$0xff] }
   0x6   :  { %231 = vmatprep.subr.bf16.mxu0 %v230_v8  ;;  %235 = vmatprep.subr.bf16.mxu1 %v230_v8  ;;  %v158_v18 = vld [vmem:[%s333_s3 + $0x18] sm:$0xff] }
   0x7   :  { %35 = vperm.xlu0 %239, %v29_v9   ;;  %45 = vperm.xlu1 %240, %v31_v10  }
   0x9   :  { %233 = vmatpush3.bf16.msra.mxu0 %v230_v8  ;;  %237 = vmatpush3.bf16.msra.mxu1 %v230_v8 }
   0xb   :  { %40 = vperm.xlu0 %239, %v30_v11   ;;  %50 = vperm.xlu1 %240, %v32_v12  }
   0xc   :  { %221 = vmatmul.mubr.msk.f32.vlgmr.msra.gmra.mrb[0].mxu0 %vm53_vm0, %v22_v13  ;;  %224 = vmatmul.mubr.msk.f32.vlgmr.msra.gmra.mrb[0].mxu1 %vm53_vm0, %v24_v14 }
   0xf   :  { %161 = vperm.xlu0 %239, %v155_v15   ;;  %166 = vperm.xlu1 %240, %v156_v16  }
  0x13   :  { %171 = vperm.xlu0 %239, %v157_v17   ;;  %176 = vperm.xlu1 %240, %v158_v18  }
  0x86   :  { %v36_v19 = vpop.permute.xlu0 %35  ;;  %v46_v20 = vpop.permute.xlu1 %45 }
  0x8a   :  { %v41_v21 = vpop.permute.xlu0 %40  ;;  %v51_v22 = vpop.permute.xlu1 %50 }
  0x8e   :  { %v162_v23 = vpop.permute.xlu0 %161  ;;  %v167_v32 = vpop.permute.xlu1 %166 }
  0x92   :  { %v172_v39 = vpop.permute.xlu0 %171  ;;  %v177_v42 = vpop.permute.xlu1 %176 }
  0xdf   :  { %v222_v24 = vpop.f32.mrb[0].mxu0  ;;  %v225_v25 = vpop.f32.mrb[0].mxu1 }
  0xe0   :  { %v138_v26 = vadd.f32 %v222_v24, %v41_v21  ;;  %v132_v27 = vpop.f32.mrb[1].mxu0  ;;  %v142_v28 = vpop.f32.mrb[1].mxu1  ;;  %v148_v29 = vadd.f32 %v225_v25, %v51_v22 }
  0xe1   :  { %v133_v30 = vadd.f32 %v132_v27, %v36_v19  ;;  %v143_v31 = vadd.f32 %v142_v28, %v46_v20 }
  0xe2   :  { %v152_v33 = vmax.f32 %v138_v26, 0.0  ;;  %v154_v37 = vmax.f32 %v148_v29, 0.0 }
  0xe3   :  { %v151_v34 = vmax.f32 %v133_v30, 0.0  ;;  %v153_v35 = vmax.f32 %v143_v31, 0.0 }
  0xe4   :  { %v180_v36 = vmul.f32 %v167_v32, %v152_v33  ;;  %v182_v43 = vmul.f32 %v177_v42, %v154_v37 }
  0xe5   :  { %v179_v38 = vmul.f32 %v162_v23, %v151_v34  ;;  %v181_v41 = vmul.f32 %v172_v39, %v153_v35 }
  0xe7   :  { %v183_v40 = vadd.f32 %v180_v36, %v179_v38 }
  0xe9   :  { %v184_v44 = vadd.f32 %v183_v40, %v181_v41 }
  0xeb   :  { %v185_v45 = vadd.f32 %v184_v44, %v182_v43 }
  0xed   :  { %v186_v46 = vrot.slane %v185_v45, 4 }
  0xef   :  { %v187_v47 = vadd.f32 %v186_v46, %v185_v45 }
  0xf1   :  { %v188_v48 = vrot.slane %v187_v47, 2 }
  0xf3   :  { %v189_v49 = vadd.f32 %v188_v48, %v187_v47 }
  0xf5   :  { %v190_v50 = vrot.slane %v189_v49, 1 }
  0xf7   :  { %v191_v52 = vadd.f32 %v190_v50, %v189_v49 }
  0xf9   :  { %v194_v53 = vadd.f32 %v193_v51, %v191_v52 }
  0xfb   :  { %195 = vst [vmem:[%s335_s5] sm:$0x1] %v194_v53 }

</bundles_post_ra>
